<compile_context>
chip_gen: v7x
topology: tpu7x:2x2x1
jax: 0.10.0
libtpu: 0.0.40
codegen_flags: <defaults>
</compile_context>

<pallas_src>
import jax
import jax.numpy as jnp
import numpy as np
from jax.experimental import pallas as pl
from jax.experimental.pallas import tpu as pltpu


def _round_up(x, m):
    return ((x + m - 1) // m) * m


# --------------------------------------------------------------------------
# Pallas kernel 1: CompTransTTS.weighted_sum
#   t : [B, D]      (cur_text_semantics_emb)
#   T : [B, N, D]   (posi_text_semantics_emb)
#   S : [B, N, D]   (posi_audio_style_emb)
#   hidd = T @ t^T  -> softmax over N -> W^T @ S  -> [B, D]
#
# The whole problem (B*N*D f32) is a few KB–MB, so everything is processed in
# a single grid step, fully resident in VMEM; this removes the per-batch
# pipeline-step overhead of the previous version.
# --------------------------------------------------------------------------
def _weighted_sum_kernel(t_ref, T_ref, S_ref, o_ref):
    t = t_ref[...].astype(jnp.float32)            # (B, D)
    Tm = T_ref[...].astype(jnp.float32)           # (B, N, D)
    Sm = S_ref[...].astype(jnp.float32)           # (B, N, D)
    # hidd = T @ t^T (elementwise-reduce form; exact)           -> (B, N)
    scores = jnp.sum(Tm * t[:, None, :], axis=-1)
    # softmax over N (torch Softmax(dim=1) on [B, N, 1])
    scores = scores - jnp.max(scores, axis=-1, keepdims=True)
    e = jnp.exp(scores)
    w = e / jnp.sum(e, axis=-1, keepdims=True)                  # (B, N)
    # W^T @ S : lane-dense multiply over D, sublane reduce over N -> (B, D)
    out = jnp.sum(w[:, :, None] * Sm, axis=1)
    o_ref[...] = out.astype(o_ref.dtype)


def weighted_sum(t, T, S):
    B, D = t.shape
    # Single invocation, whole arrays brought into VMEM (no grid).
    return pl.pallas_call(
        _weighted_sum_kernel,
        out_shape=jax.ShapeDtypeStruct((B, D), t.dtype),
    )(t, T, S)


# --------------------------------------------------------------------------
# Pallas kernel 2: conditioning add + mel_linear projection
#   x    : [B, S, H]   (decoder output)
#   cond : [B, 1, H]   (style/speaker conditioning, one vector per utterance;
#                       broadcast happens *inside* the kernel, not in HBM)
#   w    : [H, Mp], b : [1, Mp]   (mel weight/bias, padded to 128 lanes)
#   out  : [B, S, Mp] = (x + cond) @ w + b       (sliced back to [B, S, M])
#
# Grid: (B, S_pad // row_tile), both axes "parallel" (megacore-shardable).
# Output lane dim padded to 128 -> unmasked lane-dense vst; row tile raised
# toward 256 (MXU-sized) with the ragged tail handled by padding S.
# --------------------------------------------------------------------------
def _cond_mel_linear_kernel(x_ref, c_ref, w_ref, b_ref, o_ref):
    x = x_ref[0].astype(jnp.float32) + c_ref[0].astype(jnp.float32)   # (rt, H)
    y = jnp.dot(x, w_ref[...].astype(jnp.float32),
                preferred_element_type=jnp.float32)                   # (rt, Mp)
    y = y + b_ref[...].astype(jnp.float32)
    o_ref[...] = y[None].astype(o_ref.dtype)


def cond_mel_linear(x, cond, w, b, *, row_tile_target=256):
    """x: [B, S, H]; cond: [B, H]; w: [H, M]; b: [M] -> [B, S, M]."""
    B, S, H = x.shape
    M = w.shape[1]

    # Pad mel output dim to a full 128-lane multiple (lane-dense stores).
    Mp = _round_up(M, 128)
    if Mp != M:
        w = jnp.pad(w, ((0, 0), (0, Mp - M)))
        b = jnp.pad(b, ((0, Mp - M),))
    b2 = b.reshape(1, Mp)

    # Row tiling: aim for 256 rows (MXU-friendly), handle ragged tail by
    # padding the sequence axis; degrade gracefully at small S.
    S8 = _round_up(S, 8)
    row_tile = min(row_tile_target, S8)
    S_pad = _round_up(S, row_tile)
    if S_pad != S:
        x = jnp.pad(x, ((0, 0), (0, S_pad - S), (0, 0)))

    cond3 = cond[:, None, :]                                          # (B, 1, H)
    grid = (B, S_pad // row_tile)

    # Explicit VMEM budget (double-buffered inputs/outputs + resident weight),
    # so the tile choice stays valid on v7x's smaller VMEM.
    f32 = 4
    vmem_need = f32 * 2 * (2 * row_tile * H        # x (2 bufs)
                           + 2 * H                 # cond (2 bufs)
                           + H * Mp + Mp           # weight + bias
                           + 2 * row_tile * Mp)    # output (2 bufs)
    vmem_limit = int(min(max(vmem_need, 4 * 1024 * 1024), 64 * 1024 * 1024))

    out = pl.pallas_call(
        _cond_mel_linear_kernel,
        out_shape=jax.ShapeDtypeStruct((B, S_pad, Mp), x.dtype),
        grid_spec=pltpu.PrefetchScalarGridSpec(
            num_scalar_prefetch=0,
            grid=grid,
            in_specs=[
                pl.BlockSpec((1, row_tile, H), lambda bi, si: (bi, si, 0)),
                pl.BlockSpec((1, 1, H),        lambda bi, si: (bi, 0, 0)),
                pl.BlockSpec((H, Mp),          lambda bi, si: (0, 0)),
                pl.BlockSpec((1, Mp),          lambda bi, si: (0, 0)),
            ],
            out_specs=pl.BlockSpec((1, row_tile, Mp),
                                   lambda bi, si: (bi, si, 0)),
        ),
        compiler_params=pltpu.CompilerParams(
            dimension_semantics=("parallel", "parallel"),
            vmem_limit_bytes=vmem_limit),
    )(x, cond3, w, b2)

    return out[:, :S, :M]


# --------------------------------------------------------------------------
# Glue (plain JAX): masks, synthetic parameters, simplified forward pass.
# --------------------------------------------------------------------------
def get_mask_from_lengths(lengths, max_len):
    ids = jnp.arange(max_len, dtype=jnp.int32)[None, :]
    return ids >= lengths[:, None]        # True == padded (torch convention)


def init_params(key, vocab, n_speaker, H, D, n_mel):
    ks = jax.random.split(key, 6)
    s = 0.02
    return {
        "phoneme_emb": jax.random.normal(ks[0], (vocab, H), jnp.float32) * s,
        "speaker_emb": jax.random.normal(ks[1], (n_speaker, H), jnp.float32) * s,
        "an_proj_w": jax.random.normal(ks[2], (D, D), jnp.float32) * s,
        "style_proj_w": jax.random.normal(ks[3], (4 * D, H), jnp.float32) * s,
        "mel_linear_w": jax.random.normal(ks[4], (H, n_mel), jnp.float32) * s,
        "mel_linear_b": jnp.zeros((n_mel,), jnp.float32),
    }


def comp_trans_tts_forward(params, speakers, texts, src_lens, max_src_len,
                           cur_sen_dig_texts,
                           cur_text_semantics_emb, cur_audio_style_emb,
                           posi_text_semantics_emb, posi_audio_style_emb,
                           nega_text_semantics_emb, nega_audio_style_emb):
    B, S = texts.shape
    H = params["phoneme_emb"].shape[1]
    n_mel = params["mel_linear_w"].shape[1]

    src_masks = get_mask_from_lengths(src_lens, max_src_len)      # [B, S] bool

    # TODO(synk): TextEncoder (transformer stack in transformers/transformer.py)
    # is external; stand-in is the phoneme embedding lookup + mask.
    text_embeds = params["phoneme_emb"][texts]                    # [B, S, H]
    texts_enc = jnp.where(src_masks[..., None], 0.0, text_embeds)

    # TODO(synk): AnVectorPredictor is an external module; stand-in linear.
    an_predict_emb = cur_sen_dig_texts @ params["an_proj_w"]      # [B, D]

    # TODO(synk): PyG hetero-graph encoders / fusion modules are external;
    # their fused conversation/sentence/word embeddings are supplied as dense
    # inputs (cur_*/posi_*/nega_* embeddings below).

    # Pallas hot path: style retrieval via weighted_sum (single VMEM pass).
    retri_style_emb = weighted_sum(cur_text_semantics_emb,
                                   posi_text_semantics_emb,
                                   posi_audio_style_emb)          # [B, D]

    style_cat_emb = jnp.concatenate(
        [retri_style_emb, cur_text_semantics_emb,
         cur_audio_style_emb, an_predict_emb], axis=-1)           # [B, 4D]
    cond = style_cat_emb @ params["style_proj_w"]                 # [B, H]
    cond = cond + params["speaker_emb"][speakers]                 # [B, H]

    # TODO(synk): VarianceAdaptor + Decoder are external modules; stand-in is
    # duration == 1 (mel_len == src_len), identity decoder, additive conditioning.
    mel_lens = src_lens
    mel_masks = src_masks

    # Pallas hot path: (decoder output + conditioning) @ mel_linear,
    # conditioning broadcast inside the kernel (no HBM duplication).
    output = cond_mel_linear(texts_enc, cond,
                             params["mel_linear_w"],
                             params["mel_linear_b"])              # [B, S, n_mel]

    # TODO(synk): PostNet 5-layer 1D-conv residual stack is external; the
    # residual contribution is identity here.
    postnet_output = output

    return ((output, postnet_output, src_masks, mel_masks, src_lens, mel_lens),
            (an_predict_emb, retri_style_emb,
             posi_text_semantics_emb, nega_text_semantics_emb,
             posi_audio_style_emb, nega_audio_style_emb))


if __name__ == "__main__":
    B, S, H, D, K = 2, 8, 32, 256, 4          # K == train_config['p_n_sample']['K']
    n_mel, vocab, n_speaker = 16, 40, 4

    key = jax.random.PRNGKey(0)
    ks = jax.random.split(key, 10)

    params = init_params(ks[0], vocab, n_speaker, H, D, n_mel)

    texts = jax.random.randint(ks[1], (B, S), 0, vocab, dtype=jnp.int32)
    speakers = jnp.array([0, 1], dtype=jnp.int32)
    src_lens = jnp.array([6, 8], dtype=jnp.int32)

    cur_sen_dig_texts = jax.random.normal(ks[2], (B, D), jnp.float32)
    cur_text_semantics_emb = jax.random.normal(ks[3], (B, D), jnp.float32)
    cur_audio_style_emb = jax.random.normal(ks[4], (B, D), jnp.float32)
    posi_text_semantics_emb = jax.random.normal(ks[5], (B, K, D), jnp.float32)
    posi_audio_style_emb = jax.random.normal(ks[6], (B, K, D), jnp.float32)
    nega_text_semantics_emb = jax.random.normal(ks[7], (B, K, D), jnp.float32)
    nega_audio_style_emb = jax.random.normal(ks[8], (B, K, D), jnp.float32)

    outs = comp_trans_tts_forward(
        params, speakers, texts, src_lens, S,
        cur_sen_dig_texts,
        cur_text_semantics_emb, cur_audio_style_emb,
        posi_text_semantics_emb, posi_audio_style_emb,
        nega_text_semantics_emb, nega_audio_style_emb)

    jax.block_until_ready(outs)

    # Lightweight numerical cross-check of the two Pallas kernels vs plain JAX.
    scores = jnp.einsum('bnd,bd->bn', posi_text_semantics_emb,
                        cur_text_semantics_emb)
    w_ref = jax.nn.softmax(scores, axis=-1)
    ws_ref = jnp.einsum('bn,bnd->bd', w_ref, posi_audio_style_emb)
    ws_pal = weighted_sum(cur_text_semantics_emb,
                          posi_text_semantics_emb, posi_audio_style_emb)
    np.testing.assert_allclose(np.asarray(ws_pal), np.asarray(ws_ref),
                               rtol=1e-5, atol=1e-5)

    print("KERNEL_OK")
</pallas_src>

<mosaic_0001>
module attributes {stable_mosaic.version = 11 : i64} {
  func.func @_weighted_sum_kernel(%arg0: memref<2x256xf32, #tpu.memory_space<vmem>>, %arg1: memref<2x4x256xf32, #tpu.memory_space<vmem>>, %arg2: memref<2x4x256xf32, #tpu.memory_space<vmem>>, %arg3: memref<2x256xf32, #tpu.memory_space<vmem>>) attributes {dimension_semantics = [], scalar_prefetch = 0 : i64, scratch_operands = 0 : i64, tpu.core_type = #tpu.core_type<tc>} {
    %c0 = arith.constant 0 : index
    %c0_0 = arith.constant 0 : index
    %0 = vector.load %arg0[%c0, %c0_0] : memref<2x256xf32, #tpu.memory_space<vmem>>, vector<2x256xf32>
    %c0_1 = arith.constant 0 : index
    %c0_2 = arith.constant 0 : index
    %c0_3 = arith.constant 0 : index
    %1 = vector.load %arg1[%c0_1, %c0_2, %c0_3] : memref<2x4x256xf32, #tpu.memory_space<vmem>>, vector<2x4x256xf32>
    %c0_4 = arith.constant 0 : index
    %c0_5 = arith.constant 0 : index
    %c0_6 = arith.constant 0 : index
    %2 = vector.load %arg2[%c0_4, %c0_5, %c0_6] : memref<2x4x256xf32, #tpu.memory_space<vmem>>, vector<2x4x256xf32>
    %3 = vector.shape_cast %0 : vector<2x256xf32> to vector<2x1x256xf32>
    %4 = vector.broadcast %3 : vector<2x1x256xf32> to vector<2x4x256xf32>
    %5 = arith.mulf %1, %4 : vector<2x4x256xf32>
    %cst = arith.constant dense<0.000000e+00> : vector<2x4xf32>
    %6 = vector.multi_reduction <add>, %5, %cst [2] : vector<2x4x256xf32> to vector<2x4xf32>
    %cst_7 = arith.constant dense<0xFF800000> : vector<2xf32>
    %7 = vector.multi_reduction <maximumf>, %6, %cst_7 [1] : vector<2x4xf32> to vector<2xf32>
    %8 = vector.shape_cast %7 : vector<2xf32> to vector<2x1xf32>
    %9 = vector.broadcast %8 : vector<2x1xf32> to vector<2x4xf32>
    %10 = arith.subf %6, %9 : vector<2x4xf32>
    %11 = math.exp %10 : vector<2x4xf32>
    %cst_8 = arith.constant dense<0.000000e+00> : vector<2xf32>
    %12 = vector.multi_reduction <add>, %11, %cst_8 [1] : vector<2x4xf32> to vector<2xf32>
    %13 = vector.shape_cast %12 : vector<2xf32> to vector<2x1xf32>
    %14 = vector.broadcast %13 : vector<2x1xf32> to vector<2x4xf32>
    %15 = arith.divf %11, %14 : vector<2x4xf32>
    %16 = vector.shape_cast %15 : vector<2x4xf32> to vector<2x4x1xf32>
    %17 = vector.broadcast %16 : vector<2x4x1xf32> to vector<2x4x256xf32>
    %18 = arith.mulf %17, %2 : vector<2x4x256xf32>
    %cst_9 = arith.constant dense<0.000000e+00> : vector<2x256xf32>
    %19 = vector.multi_reduction <add>, %18, %cst_9 [1] : vector<2x4x256xf32> to vector<2x256xf32>
    %c0_10 = arith.constant 0 : index
    %c0_11 = arith.constant 0 : index
    %20 = vector.load %arg3[%c0_10, %c0_11] : memref<2x256xf32, #tpu.memory_space<vmem>>, vector<2x256xf32>
    tpu.vector_store %arg3[%c0_10, %c0_11], %19 {strides = array<i32>} : memref<2x256xf32, #tpu.memory_space<vmem>>, vector<2x256xf32>,
    return
  }
}

</mosaic_0001>

<bundles_post_ra>
// kernel: tpu_custom_call.1
= control target key start
LH: loop header
LB: loop body
LE: loop exit
PB: predicated region body
PF: predicated region fallthrough
CT: control target
= control target key end

     0   :  { %8 = vsyncpa [#allocation3], 0  ;;  %s499_s0 = inlined_call_operand.hbm [shape: f32[2,256], index: 0, kind: input, shape index: {}]   ;;  %s500_s1 = inlined_call_operand.hbm [shape: f32[2,4,256], index: 1, kind: input, shape index: {}]   ;;  %s501_s2 = inlined_call_operand.hbm [shape: f32[2,4,256], index: 2, kind: input, shape index: {}]   ;;  %s502_s3 = inlined_call_operand.hbm [shape: f32[2,256], index: 3, kind: output, shape index: {}]  }
   0x1   :  { %9 = vsyncpa [#allocation6], 0 }
   0x2   :  { %10 = vsyncpa [#allocation4], 0  ;;  %s392_s12 = smov [#allocation5]   ;;  %s298_s16 = scalar_lea.hbm %s500_s1, 256 }
   0x3   :  { %s26_s13 = sshll.u32 %s392_s12, 4  ;;  %p299_p0 = scmp.ne.s32.totalorder %s500_s1, %s298_s16  ;;  %s27_s13 = int_to_ptr.vmem [resolvable:$true] %s26_s13 }
   0x4   :  { %p302_p1 = scmp.lt.u32.totalorder %s298_s16, %s500_s1 }
   0x6   :  { %p304_p2 = pnand %p302_p1, %p299_p0 }
   0x8   :  { %307 = shalt.err (!%p304_p2)
}
   0x9   :  { %s308_s21 = scalar_lea.vmem %s27_s13, 256  ;;  %p313_p4 = scmp.lt.s32.totalorder %s27_s13, %s27_s13 }
   0xa   :  { %p309_p3 = scmp.ne.s32.totalorder %s27_s13, %s308_s21  ;;  %p314_p5 = scmp.lt.s32.totalorder %s308_s21, %s308_s21 }
   0xc   :  { %p315_p6 = por %p314_p5, %p313_p4 }
   0xe   :  { %p316_p7 = pnand %p315_p6, %p309_p3 }
  0x10   :  { %319 = shalt.err (!%p316_p7)
}
  0x11   :  { %s393_s22 = smov 128   ;;  %s394_s23 = smov 8  }
  0x12   :  { %32 = dma.hbm_to_vmem [thread:$0]  %s500_s1, 256, %s27_s13, [#allocation6], %s393_s22, %s393_s22, %s394_s23  }
  0x13   :  { %s395_s26 = smov [#allocation2]   ;;  %s396_s28 = smov [#allocation7]  }
  0x14   :  { %s17_s27 = sshll.u32 %s395_s26, 4  ;;  %s38_s29 = sshll.u32 %s396_s28, 4  ;;  %s18_s27 = int_to_ptr.vmem [resolvable:$true] %s17_s27  ;;  %s39_s29 = int_to_ptr.vmem [resolvable:$true] %s38_s29 }
  0x15   :  { %s320_s5 = scalar_lea.hbm %s499_s0, 64 }
  0x16   :  { %p321_p8 = scmp.ne.s32.totalorder %s499_s0, %s320_s5  ;;  %p324_p9 = scmp.lt.u32.totalorder %s320_s5, %s499_s0 }
  0x18   :  { %p326_p10 = pnand %p324_p9, %p321_p8 }
  0x1a   :  { %329 = shalt.err (!%p326_p10)
}
  0x1b   :  { %s330_s1 = scalar_lea.vmem %s18_s27, 64  ;;  %p335_p12 = scmp.lt.s32.totalorder %s18_s27, %s18_s27 }
  0x1c   :  { %p331_p11 = scmp.ne.s32.totalorder %s18_s27, %s330_s1  ;;  %p336_p13 = scmp.lt.s32.totalorder %s330_s1, %s330_s1 }
  0x1e   :  { %p337_p0 = por %p336_p13, %p335_p12 }
  0x20   :  { %p338_p1 = pnand %p337_p0, %p331_p11 }
  0x22   :  { %341 = shalt.err (!%p338_p1)
}
  0x23   :  { %20 = dma.hbm_to_vmem [thread:$0]  %s499_s0, 64, %s18_s27, [#allocation3]  }
  0x24   :  { %s342_s14 = scalar_lea.hbm %s501_s2, 256 }
  0x25   :  { %p343_p2 = scmp.ne.s32.totalorder %s501_s2, %s342_s14  ;;  %p346_p3 = scmp.lt.u32.totalorder %s342_s14, %s501_s2 }
  0x27   :  { %p348_p4 = pnand %p346_p3, %p343_p2 }
  0x29   :  { %351 = shalt.err (!%p348_p4)
}
  0x2a   :  { %s352_s19 = scalar_lea.vmem %s39_s29, 256  ;;  %p357_p6 = scmp.lt.s32.totalorder %s39_s29, %s39_s29 }
  0x2b   :  { %p353_p5 = scmp.ne.s32.totalorder %s39_s29, %s352_s19  ;;  %p358_p7 = scmp.lt.s32.totalorder %s352_s19, %s352_s19 }
  0x2d   :  { %p359_p8 = por %p358_p7, %p357_p6 }
  0x2f   :  { %p360_p9 = pnand %p359_p8, %p353_p5 }
  0x31   :  { %363 = shalt.err (!%p360_p9)
}
  0x32   :  { %44 = dma.hbm_to_vmem [thread:$0]  %s501_s2, 256, %s39_s29, [#allocation6], %s393_s22, %s393_s22, %s394_s23  }
  0x33   :  { %386 = dma.done.wait [#allocation3], 64  }
  0x34   :  { %387 = vsyncadd [#allocation3], 4294967232 }
  0x35   :  { %388 = dma.done.wait [#allocation6], 512  }
  0x36   :  { %389 = vsyncadd [#allocation6], 4294966784  ;;  %v68_v0 = vlaneseq  ;;  %v277_v4 = vld.sshfl [vmem:[#allocation2] sm:$0x33 pattern:$0x75316420] }
  0x37   :  { %v67_v7 = vcombine.high %v277_v4, %v277_v4  ;;  %v55_v8 = vld [vmem:[#allocation5] sm:$0xff]  ;;  %vm96_vm0 = vcmask 1043456   ;;  %v56_v12 = vld [vmem:[#allocation5 + $0x8] sm:$0xff]  ;;  %vm119_vm1 = vcmask 1041409   ;;  %vm122_vm2 = vcmask 25600   ;;  %v58_v55 = vld [vmem:[#allocation7 + $0x8] sm:$0xff] }
  0x38   :  { %v462_v1 = vshrl.u32 %v68_v0, 7  ;;  %v110_v24 = vand.u32 127, %v68_v0  ;;  %v397_v32 = vmov 0   ;;  %v192_v56 = vcombine.high %v58_v55, %v58_v55  ;;  %v57_v57 = vld [vmem:[#allocation7] sm:$0xff]  ;;  %s399_s2 = smov [#allocation8]  }
  0x39   :  { %287 = vset.pattern.permute.xlu0 %v397_v32  ;;  %286 = vset.pattern.permute.xlu1 %v397_v32  ;;  %v191_v61 = vcombine.high %v57_v57, %v57_v57  ;;  %vm253_vm3 = vcmask 1043459   ;;  %vm255_vm4 = vcmask 1045509   ;;  %s267_s21 = sshll.u32 %s399_s2, 4  ;;  %vm257_vm5 = vcmask 1047559   ;;  %s268_s21 = int_to_ptr.vmem [resolvable:$true] %s267_s21 }
  0x3a   :  { %v465_v2 = vsub.s32 0, %v462_v1  ;;  %v74_v3 = vsub.s32 1, %v462_v1  ;;  %v113_v26 = vsub.s32 %v110_v24, %v462_v1  ;;  %s364_s22 = scalar_lea.vmem %s268_s21, 64  ;;  %p369_p11 = scmp.lt.s32.totalorder %s268_s21, %s268_s21 }
  0x3b   :  { %p365_p10 = scmp.ne.s32.totalorder %s268_s21, %s364_s22  ;;  %p370_p12 = scmp.lt.s32.totalorder %s364_s22, %s364_s22 }
  0x3c   :  { %v71_v5 = vrot.slane %v277_v4, %v465_v2  ;;  %v75_v6 = vrot.slane %v277_v4, %v74_v3  ;;  %v79_v10 = vrot.slane %v67_v7, %v465_v2  ;;  %v83_v11 = vrot.slane %v67_v7, %v74_v3 }
  0x3d   :  { %v398_v4 = vmov 1983009808   ;;  %p371_p13 = por %p370_p12, %p369_p11 }
  0x3e   :  { %v84_v9 = vcombine.low %v71_v5, %v75_v6  ;;  %v85_v14 = vcombine.low %v79_v10, %v83_v11  ;;  %v233_v5 = vunpack.c.l.s4 %v398_v4 }
  0x3f   :  { %p372_p0 = pnand %p371_p13, %p365_p10 }
  0x40   :  { %v88_v13 = vmul.f32 %v84_v9, %v55_v8  ;;  %v89_v17 = vmul.f32 %v85_v14, %v56_v12 }
  0x42   :  { %v92_v15 = vcombine.high %v88_v13, %v88_v13  ;;  %v97_v16 = vsel %vm96_vm0, %v88_v13, 0.0  ;;  %v93_v19 = vcombine.high %v89_v17, %v89_v17  ;;  %v102_v20 = vsel %vm96_vm0, %v89_v17, 0.0 }
  0x44   :  { %v98_v18 = vsel %vm96_vm0, %v92_v15, 0.0  ;;  %v103_v22 = vsel %vm96_vm0, %v93_v19, 0.0 }
  0x45   :  { %v99_v21 = vadd.f32 %v98_v18, %v97_v16  ;;  %v104_v23 = vadd.f32 %v103_v22, %v102_v20  ;;  %v234_v16 = vunpack.c.0.s8 %v233_v5 }
  0x47   :  { %100 = vadd.xlane.f32.xlu0 %v99_v21 }
  0x4b   :  { %105 = vadd.xlane.f32.xlu0 %v104_v23 }
  0xd4   :  { %v101_v25 = vpop.xlane.xlu0 %100 }
  0xd5   :  { %v114_v28 = vrot.slane %v101_v25, %v113_v26 }
  0xd8   :  { %v106_v27 = vpop.xlane.xlu0 %105 }
  0xd9   :  { %v118_v29 = vrot.slane %v106_v27, %v113_v26 }
  0xdb   :  { %v120_v30 = vsel %vm119_vm1, %v118_v29, %v114_v28 }
  0xdc   :  { %v123_v31 = vsel %vm122_vm2, %v120_v30, -inf }
  0xdd   :  { %124 = vmax.xlane.f32.xlu1 %v123_v31 }
 0x16a   :  { %v125_v33 = vpop.xlane.xlu1 %124 }
 0x16b   :  { %v130_v34 = vrot.slane %v125_v33, %v465_v2  ;;  %v134_v35 = vrot.slane %v125_v33, %v74_v3 }
 0x16d   :  { %v137_v36 = vsub.f32 %v101_v25, %v130_v34  ;;  %v138_v37 = vsub.f32 %v106_v27, %v134_v35  ;;  %v237_v25 = vsub.s32 %v234_v16, %v462_v1 }
 0x16f   :  { %v139_v38 = vmul.f32 1.442695, %v137_v36  ;;  %v141_v39 = vmul.f32 1.442695, %v138_v37 }
 0x171   :  { %290 = vpow2.f32 %v139_v38 }
 0x172   :  { %292 = vpow2.f32 %v141_v39 }
 0x17b   :  { %v291_v40 = vpop.eup %290 }
 0x17c   :  { %v293_v41 = vpop.eup %292  ;;  %146 = vperm.xlu1 %286, %v291_v40  }
 0x17d   :  { %149 = vperm.xlu0 %287, %v293_v41  }
 0x1fb   :  { %v147_v42 = vpop.permute.xlu1 %146 }
 0x1fc   :  { %v150_v43 = vpop.permute.xlu0 %149  ;;  %v154_v44 = vrot.slane %v147_v42, %v113_v26 }
 0x1fd   :  { %v158_v45 = vrot.slane %v150_v43, %v113_v26 }
 0x1ff   :  { %v159_v46 = vsel %vm119_vm1, %v158_v45, %v154_v44 }
 0x200   :  { %v161_v47 = vsel %vm122_vm2, %v159_v46, 0.0 }
 0x201   :  { %162 = vadd.xlane.f32.xlu1 %v161_v47 }
 0x28e   :  { %v163_v48 = vpop.xlane.xlu1 %162 }
 0x28f   :  { %v172_v49 = vrot.slane %v163_v48, %v74_v3  ;;  %v168_v50 = vrot.slane %v163_v48, %v465_v2 }
 0x291   :  { %294 = vrcp.f32 %v172_v49 }
 0x292   :  { %296 = vrcp.f32 %v168_v50 }
 0x29b   :  { %v295_v51 = vpop.eup %294 }
 0x29c   :  { %v178_v52 = vmul.f32 %v295_v51, %v293_v41  ;;  %v297_v53 = vpop.eup %296 }
 0x29d   :  { %v176_v54 = vmul.f32 %v297_v53, %v291_v40 }
 0x29e   :  { %186 = vperm.xlu0 %287, %v178_v52  }
 0x2a2   :  { %181 = vperm.xlu0 %287, %v176_v54  }
 0x31d   :  { %v187_v58 = vpop.permute.xlu0 %186 }
 0x31e   :  { %v197_v59 = vmul.f32 %v187_v58, %v58_v55  ;;  %v198_v60 = vmul.f32 %v192_v56, %v187_v58 }
 0x320   :  { %v213_v62 = vsel %vm96_vm0, %v197_v59, 0.0  ;;  %v220_v63 = vsel %vm96_vm0, %v198_v60, 0.0 }
 0x321   :  { %v214_v0 = vrot.slane %v213_v62, 4  ;;  %v221_v2 = vrot.slane %v220_v63, 4  ;;  %v182_v3 = vpop.permute.xlu0 %181 }
 0x322   :  { %v195_v6 = vmul.f32 %v182_v3, %v57_v57  ;;  %v196_v7 = vmul.f32 %v191_v61, %v182_v3 }
 0x323   :  { %v215_v8 = vadd.f32 %v214_v0, %v213_v62  ;;  %v222_v9 = vadd.f32 %v221_v2, %v220_v63 }
 0x324   :  { %v199_v10 = vsel %vm96_vm0, %v195_v6, 0.0  ;;  %v206_v11 = vsel %vm96_vm0, %v196_v7, 0.0 }
 0x325   :  { %v216_v12 = vrot.slane %v215_v8, 2  ;;  %v223_v13 = vrot.slane %v222_v9, 2  ;;  %v200_v14 = vrot.slane %v199_v10, 4  ;;  %v207_v15 = vrot.slane %v206_v11, 4 }
 0x327   :  { %v217_v17 = vadd.f32 %v216_v12, %v215_v8  ;;  %v224_v18 = vadd.f32 %v223_v13, %v222_v9  ;;  %v201_v19 = vadd.f32 %v200_v14, %v199_v10  ;;  %v208_v20 = vadd.f32 %v207_v15, %v206_v11 }
 0x329   :  { %v218_v21 = vrot.slane %v217_v17, 1  ;;  %v225_v22 = vrot.slane %v224_v18, 1  ;;  %v202_v23 = vrot.slane %v201_v19, 2  ;;  %v209_v24 = vrot.slane %v208_v20, 2 }
 0x32b   :  { %v219_v26 = vadd.f32 %v218_v21, %v217_v17  ;;  %v226_v27 = vadd.f32 %v225_v22, %v224_v18  ;;  %v203_v28 = vadd.f32 %v202_v23, %v201_v19  ;;  %v210_v29 = vadd.f32 %v209_v24, %v208_v20 }
 0x32d   :  { %v239_v30 = vcombine.low %v219_v26, %v226_v27  ;;  %v204_v31 = vrot.slane %v203_v28, 1  ;;  %v211_v32 = vrot.slane %v210_v29, 1 }
 0x32f   :  { %v205_v33 = vadd.f32 %v204_v31, %v203_v28  ;;  %v212_v34 = vadd.f32 %v211_v32, %v210_v29  ;;  %v246_v35 = vrot.slane %v239_v30, %v237_v25 }
 0x331   :  { %v231_v36 = vcombine.low %v205_v33, %v212_v34  ;;  %v251_v38 = vrot.slane %v246_v35, 7 }
 0x333   :  { %v238_v37 = vrot.slane %v231_v36, %v237_v25 }
 0x335   :  { %v252_v39 = vsel %vm119_vm1, %v251_v38, %v238_v37 }
 0x336   :  { %v254_v1 = vsel %vm253_vm3, %v251_v38, %v252_v39 }
 0x337   :  { %v256_v40 = vsel %vm255_vm4, %v251_v38, %v254_v1 }
 0x338   :  { %v258_v41 = vsel %vm257_vm5, %v251_v38, %v256_v40 }
 0x339   :  { %260 = vst [vmem:[#allocation8] sm:$0xf] %v258_v41 }
 0x33a   :  { %375 = shalt.err (!%p372_p0)
}
 0x33b   :  { %s376_s25 = scalar_lea.hbm %s502_s3, 64 }
 0x33c   :  { %p377_p1 = scmp.ne.s32.totalorder %s502_s3, %s376_s25  ;;  %p380_p2 = scmp.lt.u32.totalorder %s376_s25, %s502_s3 }
 0x33e   :  { %p382_p3 = pnand %p380_p2, %p377_p1 }
 0x340   :  { %385 = shalt.err (!%p382_p3)
}
 0x341   :  { %270 = dma.vmem_to_hbm [thread:$0]  %s268_s21, 64, %s502_s3, [#allocation4]  }
 0x342   :  { %390 = dma.done.wait [#allocation4], 64  }
 0x343   :  { %391 = vsyncadd [#allocation4], 4294967232 }
 0x344   :  { %274 = vsyncpa [#allocation3], 1 }
 0x345   :  { %275 = vsyncpa [#allocation6], 1 }
 0x346   :  { %276 = vsyncpa [#allocation4], 1 }

</bundles_post_ra>
